<compile_context>
chip_gen: v6e
topology: v6e:2x2x1
jax: 0.10.0
libtpu: 0.0.40
codegen_flags: <defaults>
</compile_context>

<pallas_src>
import functools

import jax
import jax.numpy as jnp
from jax.experimental import pallas as pl
from jax.experimental.pallas import tpu as pltpu

# ----------------------------- model hyper-params ----------------------------
IN_CHANNELS = 3       # RGB images (both autoencoder outputs and real imgs)
HIDDEN = 32           # backbone feature channels
NUM_ANCHORS = 2       # anchors per spatial location
NUM_CLASSES = 8       # classes predicted per anchor
REG_ROWS = NUM_ANCHORS * 4                       # 8
HEAD_OUT = REG_ROWS + NUM_ANCHORS * NUM_CLASSES  # 8 + 16 = 24


# --------------------- fused SSD head (x2) + loss kernel ----------------------
def ssd_fused_kernel(out_img_ref, gt_img_ref, w1_ref, b1_ref, w2_ref, b2_ref,
                     part_ref, *, tile, n_tiles, tail_valid, accumulate):
    """Per (batch, spatial-tile): run the SSD head on both images and reduce the loss.

    out_img_ref / gt_img_ref : (C, tile)  channels on sublanes, spatial on lanes
    w1_ref (HIDDEN, C) bf16, b1_ref (HIDDEN, 1) f32
    w2_ref (HEAD_OUT, HIDDEN) bf16, b2_ref (HEAD_OUT, 1) f32
    part_ref : (8, 128) f32 -- [0,0] = bbox partial sum, [0,1] = cls partial sum
    """
    w1 = w1_ref[...]
    b1 = b1_ref[...]
    w2 = w2_ref[...]
    b2 = b2_ref[...]

    # --- merged SSD head: both images lane-concatenated -> ONE matmul pair per tile.
    # Left half = "model.train(); model(images=outputs, ...)", right half =
    # "model.eval(); model(imgs)" (the synthetic targets).  bf16 only on MXU operands.
    xb = jnp.concatenate(
        [out_img_ref[...].astype(jnp.bfloat16),
         gt_img_ref[...].astype(jnp.bfloat16)], axis=-1)          # (C, 2*tile) bf16
    h = jnp.dot(w1, xb, preferred_element_type=jnp.float32) + b1   # (HIDDEN, 2*tile) f32
    h = jnp.maximum(h, 0.0).astype(jnp.bfloat16)                   # fused ReLU + cast
    y = jnp.dot(w2, h, preferred_element_type=jnp.float32) + b2    # (HEAD_OUT, 2*tile)

    pred = y[:, :tile]       # head on autoencoder outputs  (128-aligned lane slice)
    gt = y[:, tile:]         # head on real images -> targets

    # Lane mask for the (zero-padded) spatial tail of the last tile.  The bbox term is
    # exactly zero there anyway (pred == gt bit-for-bit on the zero pad), but the CE
    # term is not, so mask both for robustness.  Static no-op when no padding exists.
    if tail_valid < tile:
        lane = jax.lax.broadcasted_iota(jnp.int32, (1, tile), 1)
        nvalid = jnp.where(pl.program_id(1) == n_tiles - 1, tail_valid, tile)
        mask = (lane < nvalid).astype(jnp.float32)                 # (1, tile)
    else:
        mask = None

    # --- bbox_regression: smooth-L1 (beta=1) over the NUM_ANCHORS*4 box rows --------
    d = pred[:REG_ROWS, :] - gt[:REG_ROWS, :]
    ad = jnp.abs(d)
    sl1 = jnp.where(ad < 1.0, 0.5 * d * d, ad - 0.5)
    if mask is not None:
        sl1 = sl1 * mask
    bbox_sum = jnp.sum(sl1)

    # --- classification: softmax CE of pred logits vs. argmax label of the GT pass --
    # One-hot target = (g >= gmax) normalized by its row sum (tie-safe, no iota/argmax
    # select chain -> less VALU/XLU work per anchor per tile).
    cls_sum = jnp.float32(0.0)
    for a in range(NUM_ANCHORS):                       # static, unrolled
        lo = REG_ROWS + a * NUM_CLASSES                # 8-aligned sublane slices
        g = gt[lo:lo + NUM_CLASSES, :]                 # (NUM_CLASSES, tile)
        p = pred[lo:lo + NUM_CLASSES, :]
        gmax = jnp.max(g, axis=0, keepdims=True)
        ge = (g >= gmax).astype(jnp.float32)
        denom = jnp.sum(ge, axis=0, keepdims=True)     # == 1 unless exact ties
        target = jnp.sum(ge * p, axis=0, keepdims=True) / denom
        pmax = jnp.max(p, axis=0, keepdims=True)
        lse = pmax + jnp.log(jnp.sum(jnp.exp(p - pmax), axis=0, keepdims=True))
        ce = lse - target                              # (1, tile)
        if mask is not None:
            ce = ce * mask
        cls_sum = cls_sum + jnp.sum(ce)

    # Lane-dense partial-sum block; everything except [0,0] / [0,1] is zero so the
    # wrapper can just sum the whole partials array.
    row = jax.lax.broadcasted_iota(jnp.int32, (8, 128), 0)
    col = jax.lax.broadcasted_iota(jnp.int32, (8, 128), 1)
    contrib = (jnp.where((row == 0) & (col == 0), bbox_sum, 0.0)
               + jnp.where((row == 0) & (col == 1), cls_sum, 0.0))

    if accumulate:
        # Output block stays resident across the (innermost, "arbitrary") ti axis.
        @pl.when(pl.program_id(1) == 0)
        def _():
            part_ref[...] = jnp.zeros_like(part_ref)
        part_ref[...] += contrib
    else:
        part_ref[...] = contrib


# ------------------------------- SSDLoss wrapper ------------------------------
def make_ssd_params(key):
    k1, k2 = jax.random.split(key)
    # Weights stored in transposed layout and bf16 (MXU operands); biases stay f32.
    w1 = (jax.random.normal(k1, (HIDDEN, IN_CHANNELS), jnp.float32) * 0.2
          ).astype(jnp.bfloat16)
    b1 = jnp.zeros((HIDDEN, 1), jnp.float32)
    w2 = (jax.random.normal(k2, (HEAD_OUT, HIDDEN), jnp.float32) * 0.1
          ).astype(jnp.bfloat16)
    b2 = jnp.zeros((HEAD_OUT, 1), jnp.float32)
    return (w1, b1, w2, b2)


def ssd_loss(outputs_nchw, imgs_nchw, params, *, tile_cols=16384):
    assert outputs_nchw.shape == imgs_nchw.shape
    b, c, h, w = outputs_nchw.shape
    hw = h * w

    # Lane-friendly tile: multiple of 128, capped at tile_cols (VMEM-safe on
    # v5e / v6e / v7x), never larger than the 128-padded spatial extent.  The spatial
    # axis is zero-padded up to a whole number of tiles; the padded tail lanes are
    # masked out of the loss inside the kernel, so no tile=hw fallback exists anymore.
    tile_cap = max(128, (tile_cols // 128) * 128)
    tile = min(tile_cap, ((hw + 127) // 128) * 128)
    n_tiles = pl.cdiv(hw, tile)
    hw_pad = n_tiles * tile
    tail_valid = hw - (n_tiles - 1) * tile

    # Free reshape (no transpose / relayout): channels on sublanes, spatial on lanes.
    outs3 = outputs_nchw.reshape(b, c, hw)
    imgs3 = imgs_nchw.reshape(b, c, hw)
    if hw_pad != hw:
        pad = ((0, 0), (0, 0), (0, hw_pad - hw))
        outs3 = jnp.pad(outs3, pad)
        imgs3 = jnp.pad(imgs3, pad)

    w1, b1, w2, b2 = params

    # Accumulate across the ti axis in the resident output block when batch >= 2
    # (bi stays "parallel" for v7x's 2 TensorCores); otherwise keep ti fully parallel.
    accumulate = b >= 2
    if accumulate:
        n_out_blocks = b
        out_spec = pl.BlockSpec((None, 8, 128), lambda bi, ti: (bi, 0, 0))
        dim_sem = ("parallel", "arbitrary")
    else:
        n_out_blocks = b * n_tiles
        out_spec = pl.BlockSpec((None, 8, 128),
                                lambda bi, ti: (bi * n_tiles + ti, 0, 0))
        dim_sem = ("parallel", "parallel")

    # Per-step VMEM footprint estimate (double-buffered inputs + concatenated bf16
    # input, layer-1/2 intermediates at 2*tile lanes, loss temporaries) -> limit with
    # 2x margin, capped under v7x's 64 MiB physical VMEM.
    twot = 2 * tile
    vmem_est = (2 * 2 * 8 * tile * 4          # double-buffered (c->8 sublane) inputs
                + 8 * twot * 2                # concatenated bf16 input
                + HIDDEN * twot * (4 + 2)     # h f32 + bf16
                + HEAD_OUT * twot * 4         # head output f32
                + 6 * 8 * tile * 4)           # smooth-L1 / CE temporaries
    vmem_limit = int(min(56 * 2**20, max(24 * 2**20, 2 * vmem_est)))

    # Advisory cost estimate: one merged head pass (== 2 SSD passes) per padded column.
    flops = 2 * 2 * b * hw_pad * (c * HIDDEN + HIDDEN * HEAD_OUT)
    transcendentals = b * hw_pad * NUM_ANCHORS * (NUM_CLASSES + 1)   # exp + log
    bytes_accessed = (2 * b * hw_pad * c * 4
                      + n_out_blocks * 8 * 128 * 4
                      + (w1.size + w2.size) * 2 + (b1.size + b2.size) * 4)

    kernel = functools.partial(ssd_fused_kernel, tile=tile, n_tiles=n_tiles,
                               tail_valid=tail_valid, accumulate=accumulate)

    partials = pl.pallas_call(
        kernel,
        out_shape=jax.ShapeDtypeStruct((n_out_blocks, 8, 128), jnp.float32),
        grid=(b, n_tiles),
        in_specs=[
            pl.BlockSpec((None, c, tile), lambda bi, ti: (bi, 0, ti)),      # outputs
            pl.BlockSpec((None, c, tile), lambda bi, ti: (bi, 0, ti)),      # imgs
            pl.BlockSpec((HIDDEN, c), lambda bi, ti: (0, 0)),               # w1
            pl.BlockSpec((HIDDEN, 1), lambda bi, ti: (0, 0)),               # b1
            pl.BlockSpec((HEAD_OUT, HIDDEN), lambda bi, ti: (0, 0)),        # w2
            pl.BlockSpec((HEAD_OUT, 1), lambda bi, ti: (0, 0)),             # b2
        ],
        out_specs=out_spec,
        compiler_params=pltpu.CompilerParams(
            dimension_semantics=dim_sem,
            vmem_limit_bytes=vmem_limit),
        cost_estimate=pl.CostEstimate(flops=flops,
                                      transcendentals=transcendentals,
                                      bytes_accessed=bytes_accessed),
    )(outs3, imgs3, w1, b1, w2, b2)

    # Global normalization once (not per tile): bbox + classification, each averaged
    # over the total (unpadded) anchor count, then summed — same structure as the
    # reference (torchvision normalizes by matched foreground anchors instead).
    n_anchors = b * hw * NUM_ANCHORS
    return jnp.sum(partials) / jnp.float32(n_anchors)


# ------------------------------------ main ------------------------------------
if __name__ == "__main__":
    key = jax.random.PRNGKey(0)
    k_out, k_img, k_par = jax.random.split(key, 3)
    params = make_ssd_params(k_par)

    # Small, 128-divisible spatial size (exercises the accumulate / batch>=2 path).
    B, C, H, W = 2, IN_CHANNELS, 16, 16
    outputs = jax.random.uniform(k_out, (B, C, H, W), jnp.float32)  # autoencoder output
    imgs = jax.random.uniform(k_img, (B, C, H, W), jnp.float32)     # real images
    loss = jax.block_until_ready(jax.jit(ssd_loss)(outputs, imgs, params))
    assert loss.shape == () and bool(jnp.isfinite(loss))

    # Non-128-divisible spatial size + batch 1 (exercises padding/masking and the
    # fully-parallel output path).
    B2, H2, W2 = 1, 18, 18
    outputs2 = jax.random.uniform(k_out, (B2, C, H2, W2), jnp.float32)
    imgs2 = jax.random.uniform(k_img, (B2, C, H2, W2), jnp.float32)
    loss2 = jax.block_until_ready(jax.jit(ssd_loss)(outputs2, imgs2, params))
    assert loss2.shape == () and bool(jnp.isfinite(loss2))

    print("KERNEL_OK")
</pallas_src>

<mosaic_0001>
module attributes {stable_mosaic.version = 11 : i64} {
  func.func @ssd_fused_kernel(%arg0: i32, %arg1: i32, %arg2: memref<1x3x256xf32, #tpu.memory_space<vmem>>, %arg3: memref<1x3x256xf32, #tpu.memory_space<vmem>>, %arg4: memref<32x3xbf16, #tpu.memory_space<vmem>>, %arg5: memref<32x1xf32, #tpu.memory_space<vmem>>, %arg6: memref<24x32xbf16, #tpu.memory_space<vmem>>, %arg7: memref<24x1xf32, #tpu.memory_space<vmem>>, %arg8: memref<1x8x128xf32, #tpu.memory_space<vmem>>) attributes {dimension_semantics = [#tpu.dimension_semantics<parallel>, #tpu.dimension_semantics<arbitrary>], iteration_bounds = array<i64: 2, 1>, scalar_prefetch = 0 : i64, scratch_operands = 0 : i64, tpu.core_type = #tpu.core_type<tc>, window_params = [{transform_indices = @transform_0, window_bounds = array<i64: 1, 3, 256>}, {transform_indices = @transform_1, window_bounds = array<i64: 1, 3, 256>}, {pipeline_mode = #tpu.pipeline_mode<synchronous>, transform_indices = @transform_2, window_bounds = array<i64: 32, 3>}, {pipeline_mode = #tpu.pipeline_mode<synchronous>, transform_indices = @transform_3, window_bounds = array<i64: 32, 1>}, {pipeline_mode = #tpu.pipeline_mode<synchronous>, transform_indices = @transform_4, window_bounds = array<i64: 24, 32>}, {pipeline_mode = #tpu.pipeline_mode<synchronous>, transform_indices = @transform_5, window_bounds = array<i64: 24, 1>}, {transform_indices = @transform_6, window_bounds = array<i64: 1, 8, 128>}]} {
    %c0 = arith.constant 0 : index
    %c0_0 = arith.constant 0 : index
    %0 = vector.load %arg4[%c0, %c0_0] : memref<32x3xbf16, #tpu.memory_space<vmem>>, vector<32x3xbf16>
    %c0_1 = arith.constant 0 : index
    %c0_2 = arith.constant 0 : index
    %1 = vector.load %arg5[%c0_1, %c0_2] : memref<32x1xf32, #tpu.memory_space<vmem>>, vector<32x1xf32>
    %c0_3 = arith.constant 0 : index
    %c0_4 = arith.constant 0 : index
    %2 = vector.load %arg6[%c0_3, %c0_4] : memref<24x32xbf16, #tpu.memory_space<vmem>>, vector<24x32xbf16>
    %c0_5 = arith.constant 0 : index
    %c0_6 = arith.constant 0 : index
    %3 = vector.load %arg7[%c0_5, %c0_6] : memref<24x1xf32, #tpu.memory_space<vmem>>, vector<24x1xf32>
    %c0_7 = arith.constant 0 : index
    %c0_8 = arith.constant 0 : index
    %c0_9 = arith.constant 0 : index
    %4 = vector.load %arg2[%c0_7, %c0_8, %c0_9] : memref<1x3x256xf32, #tpu.memory_space<vmem>>, vector<1x3x256xf32>
    %5 = vector.shape_cast %4 : vector<1x3x256xf32> to vector<3x256xf32>
    %6 = arith.truncf %5 : vector<3x256xf32> to vector<3x256xbf16>
    %c0_10 = arith.constant 0 : index
    %c0_11 = arith.constant 0 : index
    %c0_12 = arith.constant 0 : index
    %7 = vector.load %arg3[%c0_10, %c0_11, %c0_12] : memref<1x3x256xf32, #tpu.memory_space<vmem>>, vector<1x3x256xf32>
    %8 = vector.shape_cast %7 : vector<1x3x256xf32> to vector<3x256xf32>
    %9 = arith.truncf %8 : vector<3x256xf32> to vector<3x256xbf16>
    %10 = tpu.concatenate %6, %9 in 1 : vector<3x256xbf16>, vector<3x256xbf16> -> vector<3x512xbf16>
    %cst = arith.constant dense<0.000000e+00> : vector<32x512xf32>
    %11 = tpu.matmul %0, %10, %cst {dimension_numbers = #tpu.dot_dimension_numbers<[1], [0], [0], [1], [0, 0, 1, 1], [], []>} : vector<32x3xbf16>, vector<3x512xbf16>, vector<32x512xf32> -> vector<32x512xf32>
    %12 = vector.broadcast %1 : vector<32x1xf32> to vector<32x512xf32>
    %13 = arith.addf %11, %12 : vector<32x512xf32>
    %cst_13 = arith.constant 0.000000e+00 : f32
    %14 = vector.broadcast %cst_13 : f32 to vector<32x512xf32>
    %15 = arith.maximumf %13, %14 : vector<32x512xf32>
    %16 = arith.truncf %15 : vector<32x512xf32> to vector<32x512xbf16>
    %cst_14 = arith.constant dense<0.000000e+00> : vector<24x512xf32>
    %17 = tpu.matmul %2, %16, %cst_14 {dimension_numbers = #tpu.dot_dimension_numbers<[1], [0], [0], [1], [0, 0, 1, 1], [], []>} : vector<24x32xbf16>, vector<32x512xbf16>, vector<24x512xf32> -> vector<24x512xf32>
    %18 = vector.broadcast %3 : vector<24x1xf32> to vector<24x512xf32>
    %19 = arith.addf %17, %18 : vector<24x512xf32>
    %20 = vector.extract_strided_slice %19 {offsets = [0, 0], sizes = [24, 256], strides = [1, 1]} : vector<24x512xf32> to vector<24x256xf32>
    %21 = vector.extract_strided_slice %19 {offsets = [0, 256], sizes = [24, 256], strides = [1, 1]} : vector<24x512xf32> to vector<24x256xf32>
    %22 = vector.extract_strided_slice %20 {offsets = [0, 0], sizes = [8, 256], strides = [1, 1]} : vector<24x256xf32> to vector<8x256xf32>
    %23 = vector.extract_strided_slice %21 {offsets = [0, 0], sizes = [8, 256], strides = [1, 1]} : vector<24x256xf32> to vector<8x256xf32>
    %24 = arith.subf %22, %23 : vector<8x256xf32>
    %25 = math.absf %24 : vector<8x256xf32>
    %cst_15 = arith.constant 1.000000e+00 : f32
    %26 = vector.broadcast %cst_15 : f32 to vector<8x256xf32>
    %27 = arith.cmpf olt, %25, %26 : vector<8x256xf32>
    %cst_16 = arith.constant 5.000000e-01 : f32
    %28 = vector.broadcast %cst_16 : f32 to vector<8x256xf32>
    %29 = arith.mulf %28, %24 : vector<8x256xf32>
    %30 = arith.mulf %29, %24 : vector<8x256xf32>
    %cst_17 = arith.constant 5.000000e-01 : f32
    %31 = vector.broadcast %cst_17 : f32 to vector<8x256xf32>
    %32 = arith.subf %25, %31 : vector<8x256xf32>
    %33 = arith.select %27, %30, %32 : vector<8x256xi1>, vector<8x256xf32>
    %34 = vector.shape_cast %33 : vector<8x256xf32> to vector<1x8x256xf32>
    %cst_18 = arith.constant dense<0.000000e+00> : vector<1xf32>
    %35 = vector.multi_reduction <add>, %34, %cst_18 [1, 2] : vector<1x8x256xf32> to vector<1xf32>
    %36 = vector.shape_cast %35 : vector<1xf32> to vector<1x1x1xf32>
    %37 = vector.extract %36[0, 0, 0] : f32 from vector<1x1x1xf32>
    %38 = vector.extract_strided_slice %21 {offsets = [8, 0], sizes = [8, 256], strides = [1, 1]} : vector<24x256xf32> to vector<8x256xf32>
    %39 = vector.extract_strided_slice %20 {offsets = [8, 0], sizes = [8, 256], strides = [1, 1]} : vector<24x256xf32> to vector<8x256xf32>
    %cst_19 = arith.constant dense<0xFF800000> : vector<256xf32>
    %40 = vector.multi_reduction <maximumf>, %38, %cst_19 [0] : vector<8x256xf32> to vector<256xf32>
    %41 = vector.shape_cast %40 : vector<256xf32> to vector<1x256xf32>
    %42 = vector.broadcast %41 : vector<1x256xf32> to vector<8x256xf32>
    %43 = arith.cmpf oge, %38, %42 : vector<8x256xf32>
    %44 = arith.extui %43 : vector<8x256xi1> to vector<8x256xi32>
    %45 = arith.sitofp %44 : vector<8x256xi32> to vector<8x256xf32>
    %cst_20 = arith.constant dense<0.000000e+00> : vector<256xf32>
    %46 = vector.multi_reduction <add>, %45, %cst_20 [0] : vector<8x256xf32> to vector<256xf32>
    %47 = vector.shape_cast %46 : vector<256xf32> to vector<1x256xf32>
    %48 = arith.mulf %45, %39 : vector<8x256xf32>
    %cst_21 = arith.constant dense<0.000000e+00> : vector<256xf32>
    %49 = vector.multi_reduction <add>, %48, %cst_21 [0] : vector<8x256xf32> to vector<256xf32>
    %50 = vector.shape_cast %49 : vector<256xf32> to vector<1x256xf32>
    %51 = arith.divf %50, %47 : vector<1x256xf32>
    %cst_22 = arith.constant dense<0xFF800000> : vector<256xf32>
    %52 = vector.multi_reduction <maximumf>, %39, %cst_22 [0] : vector<8x256xf32> to vector<256xf32>
    %53 = vector.shape_cast %52 : vector<256xf32> to vector<1x256xf32>
    %54 = vector.broadcast %53 : vector<1x256xf32> to vector<8x256xf32>
    %55 = arith.subf %39, %54 : vector<8x256xf32>
    %56 = math.exp %55 : vector<8x256xf32>
    %cst_23 = arith.constant dense<0.000000e+00> : vector<256xf32>
    %57 = vector.multi_reduction <add>, %56, %cst_23 [0] : vector<8x256xf32> to vector<256xf32>
    %58 = vector.shape_cast %57 : vector<256xf32> to vector<1x256xf32>
    %59 = math.log %58 : vector<1x256xf32>
    %60 = arith.addf %53, %59 : vector<1x256xf32>
    %61 = arith.subf %60, %51 : vector<1x256xf32>
    %62 = vector.shape_cast %61 : vector<1x256xf32> to vector<1x1x256xf32>
    %cst_24 = arith.constant dense<0.000000e+00> : vector<1xf32>
    %63 = vector.multi_reduction <add>, %62, %cst_24 [1, 2] : vector<1x1x256xf32> to vector<1xf32>
    %64 = vector.shape_cast %63 : vector<1xf32> to vector<1x1x1xf32>
    %65 = vector.extract %64[0, 0, 0] : f32 from vector<1x1x1xf32>
    %cst_25 = arith.constant 0.000000e+00 : f32
    %66 = arith.addf %cst_25, %65 : f32
    %67 = vector.extract_strided_slice %21 {offsets = [16, 0], sizes = [8, 256], strides = [1, 1]} : vector<24x256xf32> to vector<8x256xf32>
    %68 = vector.extract_strided_slice %20 {offsets = [16, 0], sizes = [8, 256], strides = [1, 1]} : vector<24x256xf32> to vector<8x256xf32>
    %cst_26 = arith.constant dense<0xFF800000> : vector<256xf32>
    %69 = vector.multi_reduction <maximumf>, %67, %cst_26 [0] : vector<8x256xf32> to vector<256xf32>
    %70 = vector.shape_cast %69 : vector<256xf32> to vector<1x256xf32>
    %71 = vector.broadcast %70 : vector<1x256xf32> to vector<8x256xf32>
    %72 = arith.cmpf oge, %67, %71 : vector<8x256xf32>
    %73 = arith.extui %72 : vector<8x256xi1> to vector<8x256xi32>
    %74 = arith.sitofp %73 : vector<8x256xi32> to vector<8x256xf32>
    %cst_27 = arith.constant dense<0.000000e+00> : vector<256xf32>
    %75 = vector.multi_reduction <add>, %74, %cst_27 [0] : vector<8x256xf32> to vector<256xf32>
    %76 = vector.shape_cast %75 : vector<256xf32> to vector<1x256xf32>
    %77 = arith.mulf %74, %68 : vector<8x256xf32>
    %cst_28 = arith.constant dense<0.000000e+00> : vector<256xf32>
    %78 = vector.multi_reduction <add>, %77, %cst_28 [0] : vector<8x256xf32> to vector<256xf32>
    %79 = vector.shape_cast %78 : vector<256xf32> to vector<1x256xf32>
    %80 = arith.divf %79, %76 : vector<1x256xf32>
    %cst_29 = arith.constant dense<0xFF800000> : vector<256xf32>
    %81 = vector.multi_reduction <maximumf>, %68, %cst_29 [0] : vector<8x256xf32> to vector<256xf32>
    %82 = vector.shape_cast %81 : vector<256xf32> to vector<1x256xf32>
    %83 = vector.broadcast %82 : vector<1x256xf32> to vector<8x256xf32>
    %84 = arith.subf %68, %83 : vector<8x256xf32>
    %85 = math.exp %84 : vector<8x256xf32>
    %cst_30 = arith.constant dense<0.000000e+00> : vector<256xf32>
    %86 = vector.multi_reduction <add>, %85, %cst_30 [0] : vector<8x256xf32> to vector<256xf32>
    %87 = vector.shape_cast %86 : vector<256xf32> to vector<1x256xf32>
    %88 = math.log %87 : vector<1x256xf32>
    %89 = arith.addf %82, %88 : vector<1x256xf32>
    %90 = arith.subf %89, %80 : vector<1x256xf32>
    %91 = vector.shape_cast %90 : vector<1x256xf32> to vector<1x1x256xf32>
    %cst_31 = arith.constant dense<0.000000e+00> : vector<1xf32>
    %92 = vector.multi_reduction <add>, %91, %cst_31 [1, 2] : vector<1x1x256xf32> to vector<1xf32>
    %93 = vector.shape_cast %92 : vector<1xf32> to vector<1x1x1xf32>
    %94 = vector.extract %93[0, 0, 0] : f32 from vector<1x1x1xf32>
    %95 = arith.addf %66, %94 : f32
    %96 = tpu.iota {dimensions = array<i32: 0>} : vector<8x128xi32>
    %97 = tpu.iota {dimensions = array<i32: 1>} : vector<8x128xi32>
    %c0_i32 = arith.constant 0 : i32
    %98 = vector.broadcast %c0_i32 : i32 to vector<8x128xi32>
    %99 = arith.cmpi eq, %96, %98 : vector<8x128xi32>
    %c0_i32_32 = arith.constant 0 : i32
    %100 = vector.broadcast %c0_i32_32 : i32 to vector<8x128xi32>
    %101 = arith.cmpi eq, %97, %100 : vector<8x128xi32>
    %102 = arith.andi %99, %101 : vector<8x128xi1>
    %cst_33 = arith.constant 0.000000e+00 : f32
    %103 = vector.broadcast %37 : f32 to vector<8x128xf32>
    %104 = vector.broadcast %cst_33 : f32 to vector<8x128xf32>
    %105 = arith.select %102, %103, %104 : vector<8x128xi1>, vector<8x128xf32>
    %c0_i32_34 = arith.constant 0 : i32
    %106 = vector.broadcast %c0_i32_34 : i32 to vector<8x128xi32>
    %107 = arith.cmpi eq, %96, %106 : vector<8x128xi32>
    %c1_i32 = arith.constant 1 : i32
    %108 = vector.broadcast %c1_i32 : i32 to vector<8x128xi32>
    %109 = arith.cmpi eq, %97, %108 : vector<8x128xi32>
    %110 = arith.andi %107, %109 : vector<8x128xi1>
    %cst_35 = arith.constant 0.000000e+00 : f32
    %111 = vector.broadcast %95 : f32 to vector<8x128xf32>
    %112 = vector.broadcast %cst_35 : f32 to vector<8x128xf32>
    %113 = arith.select %110, %111, %112 : vector<8x128xi1>, vector<8x128xf32>
    %114 = arith.addf %105, %113 : vector<8x128xf32>
    %c0_i32_36 = arith.constant 0 : i32
    %115 = arith.cmpi eq, %arg1, %c0_i32_36 : i32
    %116 = arith.extui %115 : i1 to i32
    %c0_i32_37 = arith.constant 0 : i32
    %117 = arith.cmpi ne, %116, %c0_i32_37 : i32
    scf.if %117 {
      %cst_44 = arith.constant 0.000000e+00 : f32
      %124 = vector.broadcast %cst_44 : f32 to vector<8x128xf32>
      %c0_45 = arith.constant 0 : index
      %c0_46 = arith.constant 0 : index
      %c0_47 = arith.constant 0 : index
      %125 = vector.load %arg8[%c0_45, %c0_46, %c0_47] : memref<1x8x128xf32, #tpu.memory_space<vmem>>, vector<1x8x128xf32>
      %126 = vector.shape_cast %125 : vector<1x8x128xf32> to vector<8x128xf32>
      %127 = vector.shape_cast %124 : vector<8x128xf32> to vector<1x8x128xf32>
      tpu.vector_store %arg8[%c0_45, %c0_46, %c0_47], %127 {strides = array<i32>} : memref<1x8x128xf32, #tpu.memory_space<vmem>>, vector<1x8x128xf32>,
    } else {
    }
    %c0_38 = arith.constant 0 : index
    %c0_39 = arith.constant 0 : index
    %c0_40 = arith.constant 0 : index
    %118 = vector.load %arg8[%c0_38, %c0_39, %c0_40] : memref<1x8x128xf32, #tpu.memory_space<vmem>>, vector<1x8x128xf32>
    %119 = vector.shape_cast %118 : vector<1x8x128xf32> to vector<8x128xf32>
    %120 = arith.addf %119, %114 : vector<8x128xf32>
    %c0_41 = arith.constant 0 : index
    %c0_42 = arith.constant 0 : index
    %c0_43 = arith.constant 0 : index
    %121 = vector.load %arg8[%c0_41, %c0_42, %c0_43] : memref<1x8x128xf32, #tpu.memory_space<vmem>>, vector<1x8x128xf32>
    %122 = vector.shape_cast %121 : vector<1x8x128xf32> to vector<8x128xf32>
    %123 = vector.shape_cast %120 : vector<8x128xf32> to vector<1x8x128xf32>
    tpu.vector_store %arg8[%c0_41, %c0_42, %c0_43], %123 {strides = array<i32>} : memref<1x8x128xf32, #tpu.memory_space<vmem>>, vector<1x8x128xf32>,
    return
  }
  func.func @transform_0(%arg0: i32, %arg1: i32) -> (i32, i32, i32) {
    %c0_i32 = arith.constant 0 : i32
    %c0_i32_0 = arith.constant 0 : i32
    return %arg0, %c0_i32, %arg1 : i32, i32, i32
  }
  func.func @transform_1(%arg0: i32, %arg1: i32) -> (i32, i32, i32) {
    %c0_i32 = arith.constant 0 : i32
    %c0_i32_0 = arith.constant 0 : i32
    return %arg0, %c0_i32, %arg1 : i32, i32, i32
  }
  func.func @transform_2(%arg0: i32, %arg1: i32) -> (i32, i32) {
    %c0_i32 = arith.constant 0 : i32
    %c0_i32_0 = arith.constant 0 : i32
    %c0_i32_1 = arith.constant 0 : i32
    return %c0_i32, %c0_i32_0 : i32, i32
  }
  func.func @transform_3(%arg0: i32, %arg1: i32) -> (i32, i32) {
    %c0_i32 = arith.constant 0 : i32
    %c0_i32_0 = arith.constant 0 : i32
    %c0_i32_1 = arith.constant 0 : i32
    return %c0_i32, %c0_i32_0 : i32, i32
  }
  func.func @transform_4(%arg0: i32, %arg1: i32) -> (i32, i32) {
    %c0_i32 = arith.constant 0 : i32
    %c0_i32_0 = arith.constant 0 : i32
    %c0_i32_1 = arith.constant 0 : i32
    return %c0_i32, %c0_i32_0 : i32, i32
  }
  func.func @transform_5(%arg0: i32, %arg1: i32) -> (i32, i32) {
    %c0_i32 = arith.constant 0 : i32
    %c0_i32_0 = arith.constant 0 : i32
    %c0_i32_1 = arith.constant 0 : i32
    return %c0_i32, %c0_i32_0 : i32, i32
  }
  func.func @transform_6(%arg0: i32, %arg1: i32) -> (i32, i32, i32) {
    %c0_i32 = arith.constant 0 : i32
    %c0_i32_0 = arith.constant 0 : i32
    %c0_i32_1 = arith.constant 0 : i32
    return %arg0, %c0_i32, %c0_i32_0 : i32, i32, i32
  }
}

</mosaic_0001>

<bundles_post_ra>
// kernel: ssd_loss.1
= control target key start
LH: loop header
LB: loop body
LE: loop exit
PB: predicated region body
PF: predicated region fallthrough
CT: control target
= control target key end

     0   :  { %s1144_s21 = smov 0   ;;  %s1146_s22 = smov 0   ;;  %s1293_s0 = inlined_call_operand.vmem [shape: f32[2,3,256], index: 0, kind: input, shape index: {}]   ;;  %s1294_s1 = inlined_call_operand.vmem [shape: f32[2,3,256], index: 1, kind: input, shape index: {}]   ;;  %s1295_s2 = inlined_call_operand.vmem [shape: bf16[32,3], index: 2, kind: input, shape index: {}]   ;;  %s1296_s3 = inlined_call_operand.vmem [shape: f32[32,1], index: 3, kind: input, shape index: {}]   ;;  %s1297_s4 = inlined_call_operand.vmem [shape: bf16[24,32], index: 4, kind: input, shape index: {}]   ;;  %s1298_s5 = inlined_call_operand.vmem [shape: f32[24,1], index: 5, kind: input, shape index: {}]   ;;  %s1299_s6 = inlined_call_operand.vmem [shape: f32[2,8,128], index: 6, kind: output, shape index: {}]  }
   0x1   :  { %s1148_s23 = smov 0  }
   0x2 LB: > { %s28_s24 = sadd.s32 1, %s1100_s22  ;;  %p989_p0 = scmp.ge.s32.totalorder %s1104_s23, 1  ;;  %s1104_s23 = sphi %s1148_s23, %s16_s23   ;;  %s1100_s22 = sphi %s1146_s22, %s1301_s22   ;;  %s1096_s21 = sphi %s1144_s21, %s1300_s21  }
   0x3   : > { %p30_p1 = scmp.ge.s32.totalorder %s28_s24, 2  ;;  %p248_p2 = scmp.lt.s32.totalorder %s1104_s23, 3 }
   0x5   : > { %s1303_s24 = smov (%p30_p1, %s28_s24), 0  ;;  %p249_p3 = pnand %p989_p0, %p248_p2 }
   0x6   : > { %p291_p4 = scmp.lt.s32.totalorder (!%p249_p3), %s1096_s21, 1 }
   0x7   : > { %252 = sbr.rel (%p249_p3) target bundleno = 726 (0x2d6), region = 44 }
   0xc   : > { %vm378_vm0 = vcmask 1040384   ;;  %vm379_vm1 = vcmask 1041408   ;;  %v1106_v0 = vmov 0   ;;  %s1305_s21 = smov (!%p291_p4, %s1096_s21), 1  ;;  %v1107_v1 = vmov 65535   ;;  %v321_v3 = vld [vmem:[%s1296_s3 + $0x10] sm:$0xff] }
   0xd   : > { %426 = vmatprep.mubr.bf16.mxu0 %v1106_v0  ;;  %479 = vmatprep.mubr.bf16.mxu1 %v1106_v0  ;;  %v380_v2 = vsel %vm378_vm0, 4294967295, %v1107_v1  ;;  %v319_v4 = vld [vmem:[%s1296_s3] sm:$0xff]  ;;  %s1173_s29 = sshll.u32 %s1305_s21, 3  ;;  %v322_v6 = vld [vmem:[%s1296_s3 + $0x18] sm:$0xff]  ;;  %v320_v7 = vld [vmem:[%s1296_s3 + $0x8] sm:$0xff]  ;;  %vm371_vm2 = vcmask 23552  }
   0xe   : > { %1050 = vset.pattern.permute.xlu0 %v1106_v0  ;;  %1051 = vset.pattern.permute.xlu1 %v1106_v0  ;;  %s298_s8 = scalar_lea.vmem %s1293_s0, %s1173_s29  ;;  %v381_v5 = vsel %vm379_vm1, %v380_v2, 0  ;;  %s308_s11 = scalar_lea.vmem %s1294_s1, %s1173_s29  ;;  %v327_v16 = vld [vmem:[%s1298_s5 + $0x8] sm:$0xff]  ;;  %v328_v17 = vld [vmem:[%s1298_s5 + $0x10] sm:$0xff]  ;;  %v1054_v22 = vld [vmem:[%s1295_s2] sm:$0xff]   ;;  %vm547_vm3 = vcmask 261120  }
   0xf   : > { %353 = vperm.xlu0 %1050, %v321_v3   ;;  %343 = vperm.xlu1 %1051, %v319_v4   ;;  %v329_v8 = vld [vmem:[%s298_s8] sm:$0x77]  ;;  %v1055_v24 = vld [vmem:[%s1295_s2 + $0x8] sm:$0xff]   ;;  %s313_s16 = scalar_lea.vmem %s1299_s6, %s1173_s29 }
  0x10   : > { %v335_v9 = vld [vmem:[%s308_s11] sm:$0x77]  ;;  %v331_v10 = vcombine.high %v329_v8, %v329_v8  ;;  %v333_v12 = vpack.c.bf16 %v329_v8, %v329_v8 }
  0x11   : > { %v337_v11 = vcombine.high %v335_v9, %v335_v9  ;;  %v339_v13 = vpack.c.bf16 %v335_v9, %v335_v9  ;;  %v326_v23 = vld [vmem:[%s1298_s5] sm:$0xff] }
  0x12   : > { %v334_v14 = vpack.c.bf16 %v331_v10, %v331_v10  ;;  %v383_v18 = vand.u32 %v381_v5, %v333_v12 }
  0x13   : > { %358 = vperm.xlu0 %1050, %v322_v6   ;;  %348 = vperm.xlu1 %1051, %v320_v7   ;;  %v340_v15 = vpack.c.bf16 %v337_v11, %v337_v11  ;;  %v389_v19 = vand.u32 %v381_v5, %v339_v13 }
  0x14   : > { %v386_v20 = vand.u32 %v381_v5, %v334_v14 }
  0x15   : > { %v392_v21 = vand.u32 %v381_v5, %v340_v15 }
  0x16   : > { %408 = vmatprep.subr.bf16.mxu0 %v386_v20 }
  0x17   : > { %531 = vperm.xlu0 %1050, %v327_v16   ;;  %536 = vperm.xlu1 %1051, %v328_v17  }
  0x18   : > { %461 = vmatprep.subr.bf16.mxu1 %v392_v21  ;;  %409 = vmatpush1.bf16.msra.mxu0 %v383_v18 }
  0x19   : > { %462 = vmatpush1.bf16.msra.mxu1 %v389_v19 }
  0x1b   : > { %526 = vperm.xlu0 %1050, %v326_v23   ;;  %997 = vmatmul.mubr.msk.bf16.vlgmr.msra.gmra.mxu0 %vm371_vm2, %v1054_v22  ;;  %v1057_v23 = vld [vmem:[%s1297_s4 + $0x8] ss:$0 sps:$4 sm:$0xff]  }
  0x1c   : > { %999 = vmatmul.mubr.msk.bf16.vlgmr.msra.gmra.mxu1 %vm371_vm2, %v1054_v22  ;;  %436 = vmatprep.mubr.bf16.mxu0 %v1106_v0  ;;  %v1056_v22 = vld [vmem:[%s1297_s4] sm:$0xff]  }
  0x1d   : > { %489 = vmatprep.mubr.bf16.mxu1 %v1106_v0 }
  0x23   : > { %998 = vmatmul.mubr.msk.bf16.gmra.mxu0 %vm371_vm2, %v1055_v24 }
  0x24   : > { %1000 = vmatmul.mubr.msk.bf16.gmra.mxu1 %vm371_vm2, %v1055_v24  ;;  %586 = vmatprep.mubr.bf16.mxu0 %v1106_v0 }
  0x25   : > { %637 = vmatprep.mubr.bf16.mxu1 %v1106_v0 }
  0x8a   : > { %v354_v31 = vpop.permute.xlu0 %353  ;;  %v344_v32 = vpop.permute.xlu1 %343 }
  0x8e   : > { %v359_v40 = vpop.permute.xlu0 %358  ;;  %v349_v41 = vpop.permute.xlu1 %348 }
  0xdb   : > { %v428_v25 = vpop.f32.mrf.mxu0 }
  0xdc   : > { %v481_v26 = vpop.f32.mrf.mxu1  ;;  %v429_v6 = vadd.f32 %v428_v25, %v344_v32 }
  0xdd   : > { %v430_v27 = vpop.f32.mrf.mxu0  ;;  %v482_v42 = vadd.f32 %v481_v26, %v344_v32  ;;  %v532_v26 = vpop.permute.xlu0 %531 }
  0xde   : > { %v483_v28 = vpop.f32.mrf.mxu1  ;;  %v431_v51 = vadd.f32 %v430_v27, %v344_v32  ;;  %v500_v19 = vmax.f32 %v429_v6, 0.0 }
  0xdf   : > { %v432_v29 = vpop.f32.mrf.mxu0  ;;  %v484_v37 = vadd.f32 %v483_v28, %v344_v32  ;;  %v502_v9 = vmax.f32 %v482_v42, 0.0 }
  0xe0   : > { %v485_v30 = vpop.f32.mrf.mxu1  ;;  %v433_v57 = vadd.f32 %v432_v29, %v349_v41  ;;  %v501_v10 = vmax.f32 %v431_v51, 0.0 }
  0xe1   : > { %v434_v33 = vpop.f32.mrf.mxu0  ;;  %v503_v52 = vmax.f32 %v484_v37, 0.0  ;;  %v486_v58 = vadd.f32 %v485_v30, %v349_v41 }
  0xe2   : > { %v487_v34 = vpop.f32.mrf.mxu1  ;;  %v435_v43 = vadd.f32 %v434_v33, %v349_v41  ;;  %v504_v13 = vmax.f32 %v433_v57, 0.0 }
  0xe3   : > { %v438_v35 = vpop.f32.mrf.mxu0  ;;  %v488_v44 = vadd.f32 %v487_v34, %v349_v41  ;;  %v506_v14 = vmax.f32 %v486_v58, 0.0 }
  0xe4   : > { %v491_v36 = vpop.f32.mrf.mxu1  ;;  %v439_v53 = vadd.f32 %v438_v35, %v354_v31  ;;  %v505_v61 = vmax.f32 %v435_v43, 0.0  ;;  %v516_v20 = vpack.c.bf16 %v504_v13, %v500_v19  ;;  %v537_v35 = vpop.permute.xlu1 %536 }
  0xe5   : > { %v440_v38 = vpop.f32.mrf.mxu0  ;;  %v492_v54 = vadd.f32 %v491_v36, %v354_v31  ;;  %v507_v62 = vmax.f32 %v488_v44, 0.0  ;;  %v518_v21 = vpack.c.bf16 %v506_v14, %v502_v9 }
  0xe6   : > { %v493_v39 = vpop.f32.mrf.mxu1  ;;  %v441_v47 = vadd.f32 %v440_v38, %v354_v31  ;;  %v508_v7 = vmax.f32 %v439_v53, 0.0  ;;  %v517_v17 = vpack.c.bf16 %v505_v61, %v501_v10 }
  0xe7   : > { %v442_v45 = vpop.f32.mrf.mxu0  ;;  %v494_v48 = vadd.f32 %v493_v39, %v354_v31  ;;  %v510_v8 = vmax.f32 %v492_v54, 0.0  ;;  %v519_v18 = vpack.c.bf16 %v507_v62, %v503_v52 }
  0xe8   : > { %v495_v46 = vpop.f32.mrf.mxu1  ;;  %v443_v49 = vadd.f32 %v442_v45, %v359_v40  ;;  %v509_v2 = vmax.f32 %v441_v47, 0.0 }
  0xe9   : > { %v496_v50 = vadd.f32 %v495_v46, %v359_v40  ;;  %v444_v55 = vpop.f32.mrf.mxu0  ;;  %v511_v3 = vmax.f32 %v494_v48, 0.0 }
  0xea   : > { %v497_v56 = vpop.f32.mrf.mxu1  ;;  %v445_v59 = vadd.f32 %v444_v55, %v359_v40  ;;  %v512_v63 = vmax.f32 %v443_v49, 0.0 }
  0xeb   : > { %v498_v60 = vadd.f32 %v497_v56, %v359_v40  ;;  %v514_v1 = vmax.f32 %v496_v50, 0.0 }
  0xec   : > { %v513_v4 = vmax.f32 %v445_v59, 0.0  ;;  %v520_v15 = vpack.c.bf16 %v512_v63, %v508_v7 }
  0xed   : > { %v515_v5 = vmax.f32 %v498_v60, 0.0  ;;  %v522_v16 = vpack.c.bf16 %v514_v1, %v510_v8 }
  0xee   : > { %v521_v11 = vpack.c.bf16 %v513_v4, %v509_v2 }
  0xef   : > { %v523_v12 = vpack.c.bf16 %v515_v5, %v511_v3 }
  0xf0   : > { %566 = vmatprep.subr.bf16.mxu0 %v521_v11 }
  0xf1   : > { %617 = vmatprep.subr.bf16.mxu1 %v523_v12  ;;  %567 = vmatpush1.bf16.msra.mxu0 %v520_v15 }
  0xf2   : > { %618 = vmatpush1.bf16.msra.mxu1 %v522_v16  ;;  %568 = vmatprep.subr.bf16.mxu0 %v517_v17 }
  0xf3   : > { %619 = vmatprep.subr.bf16.mxu1 %v519_v18 }
  0xf5   : > { %569 = vmatpush1.bf16.msra.mxu0 %v516_v20 }
  0xf6   : > { %620 = vmatpush1.bf16.msra.mxu1 %v518_v21 }
  0xf8   : > { %1003 = vmatmul.mubr.msk.bf16.vlgmr.msra.gmra.mxu0 %vm547_vm3, %v1056_v22 }
  0xf9   : > { %1005 = vmatmul.mubr.msk.bf16.vlgmr.msra.gmra.mxu1 %vm547_vm3, %v1056_v22  ;;  %596 = vmatprep.mubr.bf16.mxu0 %v1106_v0 }
  0xfa   : > { %647 = vmatprep.mubr.bf16.mxu1 %v1106_v0  ;;  %v527_v0 = vpop.permute.xlu0 %526 }
 0x100   : > { %1004 = vmatmul.mubr.msk.bf16.gmra.mxu0 %vm547_vm3, %v1057_v23 }
 0x101   : > { %1006 = vmatmul.mubr.msk.bf16.gmra.mxu1 %vm547_vm3, %v1057_v23 }
 0x1b8   : > { %v588_v24 = vpop.f32.mrf.mxu0 }
 0x1b9   : > { %v639_v25 = vpop.f32.mrf.mxu1  ;;  %v589_v39 = vadd.f32 %v588_v24, %v527_v0 }
 0x1ba   : > { %v590_v27 = vpop.f32.mrf.mxu0  ;;  %v640_v47 = vadd.f32 %v639_v25, %v527_v0 }
 0x1bb   : > { %v641_v28 = vpop.f32.mrf.mxu1  ;;  %v591_v48 = vadd.f32 %v590_v27, %v527_v0 }
 0x1bc   : > { %v592_v29 = vpop.f32.mrf.mxu0  ;;  %v642_v4 = vadd.f32 %v641_v28, %v527_v0  ;;  %v656_v22 = vsub.f32 %v589_v39, %v640_v47 }
 0x1bd   : > { %v643_v30 = vpop.f32.mrf.mxu1  ;;  %v1216_v31 = vadd.f32 %v592_v29, %v532_v26  ;;  %v1108_v29 = vmov 0.0  }
 0x1be   : > { %v1218_v32 = vadd.f32 %v643_v30, %v532_v26  ;;  %v594_v33 = vpop.f32.mrf.mxu0 }
 0x1bf   : > { %v645_v34 = vpop.f32.mrf.mxu1  ;;  %v728_v36 = vrot.slane %v1216_v31, 4  ;;  %v1222_v38 = vadd.f32 %v594_v33, %v532_v26 }
 0x1c0   : > { %v680_v37 = vrot.slane %v1218_v32, 4  ;;  %v1224_v40 = vadd.f32 %v645_v34, %v532_v26  ;;  %v598_v41 = vpop.f32.mrf.mxu0 }
 0x1c1   : > { %v649_v42 = vpop.f32.mrf.mxu1  ;;  %v729_v43 = vmax.f32 %v1216_v31, %v728_v36  ;;  %v734_v45 = vrot.slane %v1222_v38, 4  ;;  %v1229_v46 = vadd.f32 %v598_v41, %v537_v35 }
 0x1c2   : > { %v681_v44 = vmax.f32 %v1218_v32, %v680_v37  ;;  %v686_v49 = vrot.slane %v1224_v40, 4  ;;  %v1232_v50 = vadd.f32 %v649_v42, %v537_v35  ;;  %v600_v51 = vpop.f32.mrf.mxu0 }
 0x1c3   : > { %v651_v52 = vpop.f32.mrf.mxu1  ;;  %v730_v53 = vrot.slane %v729_v43, 2  ;;  %v735_v55 = vmax.f32 %v1222_v38, %v734_v45  ;;  %v827_v56 = vrot.slane %v1229_v46, 4  ;;  %v1238_v59 = vadd.f32 %v600_v51, %v537_v35 }
 0x1c4   : > { %v682_v54 = vrot.slane %v681_v44, 2  ;;  %v687_v57 = vmax.f32 %v1224_v40, %v686_v49  ;;  %v779_v58 = vrot.slane %v1232_v50, 4  ;;  %v1240_v60 = vadd.f32 %v651_v52, %v537_v35  ;;  %v602_v61 = vpop.f32.mrf.mxu0 }
 0x1c5   : > { %v653_v62 = vpop.f32.mrf.mxu1  ;;  %v731_v63 = vmax.f32 %v729_v43, %v730_v53  ;;  %v736_v2 = vrot.slane %v735_v55, 2  ;;  %v828_v3 = vmax.f32 %v1229_v46, %v827_v56  ;;  %v833_v7 = vrot.slane %v1238_v59, 4 }
 0x1c6   : > { %v683_v1 = vmax.f32 %v681_v44, %v682_v54  ;;  %v688_v5 = vrot.slane %v687_v57, 2  ;;  %v780_v6 = vmax.f32 %v1232_v50, %v779_v58  ;;  %v603_v8 = vpop.f32.mrf.mxu0  ;;  %v785_v17 = vrot.slane %v1240_v60, 4 }
 0x1c7   : > { %v654_v9 = vpop.f32.mrf.mxu1  ;;  %v732_v10 = vrot.slane %v731_v63, 1  ;;  %v737_v12 = vmax.f32 %v735_v55, %v736_v2  ;;  %v829_v13 = vrot.slane %v828_v3, 2  ;;  %v834_v16 = vmax.f32 %v1238_v59, %v833_v7 }
 0x1c8   : > { %v684_v11 = vrot.slane %v683_v1, 1  ;;  %v689_v14 = vmax.f32 %v687_v57, %v688_v5  ;;  %v781_v15 = vrot.slane %v780_v6, 2  ;;  %v657_v35 = vsub.f32 %v591_v48, %v642_v4 }
 0x1c9   : > { %v1247_v18 = vmax.f32 %v731_v63, %v732_v10  ;;  %v738_v20 = vrot.slane %v737_v12, 1  ;;  %v830_v21 = vmax.f32 %v828_v3, %v829_v13  ;;  %v835_v25 = vrot.slane %v834_v16, 2 }
 0x1ca   : > { %v685_v19 = vmax.f32 %v683_v1, %v684_v11  ;;  %v690_v23 = vrot.slane %v689_v14, 1  ;;  %v782_v24 = vmax.f32 %v780_v6, %v781_v15  ;;  %v786_v39 = vmax.f32 %v1240_v60, %v785_v17 }
 0x1cb   : > { %v740_v26 = vsub.f32 %v1216_v31, %v1247_v18  ;;  %v1252_v27 = vmax.f32 %v737_v12, %v738_v20  ;;  %v831_v28 = vrot.slane %v830_v21, 1  ;;  %v836_v0 = vmax.f32 %v834_v16, %v835_v25 }
 0x1cc   : > { %vm692_vm4 = vcmp.ge.f32.partialorder %v1218_v32, %v685_v19  ;;  %v691_v33 = vmax.f32 %v689_v14, %v690_v23  ;;  %v783_v34 = vrot.slane %v782_v24, 1  ;;  %v662_v43 = vmul.f32 0.5, %v656_v22 }
 0x1cd   : > { %v1009_v30 = vsel %vm692_vm4, 1.0, %v1108_v29  ;;  %v742_v36 = vmul.f32 1.442695, %v740_v26  ;;  %v741_v37 = vsub.f32 %v1222_v38, %v1252_v27  ;;  %v1258_v41 = vmax.f32 %v830_v21, %v831_v28 }
 0x1ce   : > { %vm693_vm5 = vcmp.ge.f32.partialorder %v1224_v40, %v691_v33  ;;  %v784_v32 = vmax.f32 %v782_v24, %v783_v34  ;;  %v837_v42 = vrot.slane %v836_v0, 1  ;;  %v698_v44 = vrot.slane %v1009_v30, 4 }
 0x1cf   : > { %1058 = vpow2.f32 %v742_v36  ;;  %v744_v45 = vmul.f32 1.442695, %v741_v37  ;;  %v1010_v47 = vsel %vm693_vm5, 1.0, %v1108_v29  ;;  %v839_v48 = vsub.f32 %v1229_v46, %v1258_v41 }
 0x1d0   : > { %vm791_vm6 = vcmp.ge.f32.partialorder %v1232_v50, %v784_v32  ;;  %v1263_v49 = vmax.f32 %v836_v0, %v837_v42  ;;  %v704_v51 = vrot.slane %v1010_v47, 4  ;;  %v787_v52 = vrot.slane %v786_v39, 2 }
 0x1d1   : > { %1060 = vpow2.f32 %v744_v45  ;;  %v658_v40 = vand.u32 2147483647, %v656_v22  ;;  %v663_v53 = vmul.f32 0.5, %v657_v35  ;;  %v841_v54 = vmul.f32 1.442695, %v839_v48 }
 0x1d2   : > { %v1011_v55 = vsel %vm791_vm6, 1.0, %v1108_v29  ;;  %v840_v56 = vsub.f32 %v1238_v59, %v1263_v49  ;;  %v659_v57 = vand.u32 2147483647, %v657_v35  ;;  %v699_v58 = vadd.f32 %v1009_v30, %v698_v44 }
 0x1d3   : > { %1062 = vpow2.f32 %v841_v54  ;;  %v705_v62 = vadd.f32 %v1010_v47, %v704_v51  ;;  %v797_v63 = vrot.slane %v1011_v55, 4  ;;  %v788_v1 = vmax.f32 %v786_v39, %v787_v52 }
 0x1d4   : > { %v843_v61 = vmul.f32 1.442695, %v840_v56  ;;  %v664_v50 = vmul.f32 %v662_v43, %v656_v22  ;;  %v665_v2 = vmul.f32 %v663_v53, %v657_v35  ;;  %v1007_v3 = vadd.f32 -0.5, %v658_v40 }
 0x1d5   : > { %v789_v4 = vrot.slane %v788_v1, 1  ;;  %vm660_vm7 = vcmp.lt.f32.partialorder %v658_v40, 1.0  ;;  %vm661_vm8 = vcmp.lt.f32.partialorder %v659_v57, 1.0  ;;  %v700_v5 = vrot.slane %v699_v58, 2 }
 0x1d6   : > { %1064 = vpow2.f32 %v843_v61  ;;  %v1008_v6 = vadd.f32 -0.5, %v659_v57  ;;  %v706_v7 = vrot.slane %v705_v62, 2  ;;  %v798_v8 = vadd.f32 %v1011_v55, %v797_v63 }
 0x1d7   : > { %v790_v9 = vmax.f32 %v788_v1, %v789_v4  ;;  %v668_v10 = vsel %vm660_vm7, %v664_v50, %v1007_v3  ;;  %v701_v14 = vadd.f32 %v700_v5, %v699_v58  ;;  %v710_v22 = vmul.f32 %v1009_v30, %v1216_v31 }
 0x1d8   : > { %v669_v11 = vsel %vm661_vm8, %v665_v2, %v1008_v6  ;;  %v707_v16 = vadd.f32 %v706_v7, %v705_v62  ;;  %v799_v17 = vrot.slane %v798_v8, 2  ;;  %v711_v26 = vmul.f32 %v1010_v47, %v1222_v38 }
 0x1d9   : > { %vm792_vm9 = vcmp.ge.f32.partialorder %v1240_v60, %v790_v9  ;;  %v670_v12 = vadd.f32 %v669_v11, %v668_v10  ;;  %v702_v25 = vrot.slane %v701_v14, 1  ;;  %v712_v39 = vrot.slane %v710_v22, 4 }
 0x1da   : > { %v1012_v15 = vsel %vm792_vm9, 1.0, %v1108_v29  ;;  %v708_v60 = vrot.slane %v707_v16, 1  ;;  %v800_v34 = vadd.f32 %v799_v17, %v798_v8  ;;  %v809_v32 = vmul.f32 %v1011_v55, %v1229_v46 }
 0x1db   : > { %v803_v19 = vrot.slane %v1012_v15, 4  ;;  %671 = vadd.xlane.f32.xlu1 %v670_v12  ;;  %v703_v31 = vadd.f32 %v702_v25, %v701_v14  ;;  %v718_v38 = vrot.slane %v711_v26, 4  ;;  %v810_v52 = vmul.f32 %v1012_v15, %v1238_v59 }
 0x1dc   : > { %v1059_v13 = vpop.eup %1058  ;;  %v709_v48 = vadd.f32 %v708_v60, %v707_v16  ;;  %v801_v47 = vrot.slane %v800_v34, 1  ;;  %v713_v56 = vadd.f32 %v712_v39, %v710_v22  ;;  %v811_v57 = vrot.slane %v809_v32, 4 }
 0x1dd   : > { %v746_v21 = vrot.slane %v1059_v13, 4  ;;  %v804_v23 = vadd.f32 %v1012_v15, %v803_v19  ;;  %1066 = vrcp.f32 %v703_v31  ;;  %v719_v63 = vadd.f32 %v718_v38, %v711_v26 }
 0x1de   : > { %v1061_v20 = vpop.eup %1060  ;;  %1068 = vrcp.f32 %v709_v48  ;;  %v802_v1 = vadd.f32 %v801_v47, %v800_v34  ;;  %v817_v2 = vrot.slane %v810_v52, 4  ;;  %v714_v5 = vrot.slane %v713_v56, 2 }
 0x1df   : > { %v752_v24 = vrot.slane %v1061_v20, 4  ;;  %v747_v28 = vadd.f32 %v1059_v13, %v746_v21  ;;  %v805_v0 = vrot.slane %v804_v23, 2  ;;  %v812_v6 = vadd.f32 %v811_v57, %v809_v32 }
 0x1e0   : > { %v1063_v33 = vpop.eup %1062  ;;  %v720_v9 = vrot.slane %v719_v63, 2  ;;  %v818_v10 = vadd.f32 %v817_v2, %v810_v52  ;;  %v715_v13 = vadd.f32 %v714_v5, %v713_v56 }
 0x1e1   : > { %v753_v35 = vadd.f32 %v1061_v20, %v752_v24  ;;  %v748_v29 = vrot.slane %v747_v28, 2  ;;  %v845_v36 = vrot.slane %v1063_v33, 4  ;;  %v806_v42 = vadd.f32 %v805_v0, %v804_v23 }
 0x1e2   : > { %v813_v12 = vrot.slane %v812_v6, 2  ;;  %v721_v14 = vadd.f32 %v720_v9, %v719_v63  ;;  %v819_v15 = vrot.slane %v818_v10, 2  ;;  %v716_v16 = vrot.slane %v715_v13, 1 }
 0x1e3   : > { %v1065_v37 = vpop.eup %1064  ;;  %v754_v43 = vrot.slane %v753_v35, 2  ;;  %v749_v30 = vadd.f32 %v748_v29, %v747_v28  ;;  %v846_v44 = vadd.f32 %v1063_v33, %v845_v36  ;;  %v807_v58 = vrot.slane %v806_v42, 1 }
 0x1e4   : > { %v851_v45 = vrot.slane %v1065_v37, 4  ;;  %v814_v17 = vadd.f32 %v813_v12, %v812_v6  ;;  %v722_v20 = vrot.slane %v721_v14, 1  ;;  %v820_v22 = vadd.f32 %v819_v15, %v818_v10 }
 0x1e5   : > { %v755_v51 = vadd.f32 %v754_v43, %v753_v35  ;;  %v750_v40 = vrot.slane %v749_v30, 1  ;;  %v847_v53 = vrot.slane %v846_v44, 2  ;;  %v808_v59 = vadd.f32 %v807_v58, %v806_v42 }
 0x1e6   : > { %v852_v54 = vadd.f32 %v1065_v37, %v851_v45  ;;  %v717_v25 = vadd.f32 %v716_v16, %v715_v13  ;;  %v815_v28 = vrot.slane %v814_v17, 1  ;;  %v723_v33 = vadd.f32 %v722_v20, %v721_v14 }
 0x1e7   : > { %v756_v61 = vrot.slane %v755_v51, 1  ;;  %v751_v46 = vadd.f32 %v750_v40, %v749_v30  ;;  %v848_v55 = vadd.f32 %v847_v53, %v846_v44  ;;  %v821_v29 = vrot.slane %v820_v22, 1 }
 0x1e8   : > { %v853_v62 = vrot.slane %v852_v54, 2  ;;  %v816_v43 = vadd.f32 %v815_v28, %v814_v17  ;;  %v878_v13 = vlaneseq }
 0x1e9   : > { %v757_v50 = vadd.f32 %v756_v61, %v755_v51  ;;  %1070 = vlog2.f32 %v751_v46  ;;  %v849_v3 = vrot.slane %v848_v55, 1  ;;  %v822_v45 = vadd.f32 %v821_v29, %v820_v22 }
 0x1ea   : > { %v854_v4 = vadd.f32 %v853_v62, %v852_v54  ;;  %v1067_v19 = vpop.eup %1066  ;;  %v879_v14 = vshrl.u32 %v878_v13, 7  ;;  %v881_v15 = vand.u32 127, %v878_v13 }
 0x1eb   : > { %1072 = vlog2.f32 %v757_v50  ;;  %v850_v7 = vadd.f32 %v849_v3, %v848_v55  ;;  %v1069_v21 = vpop.eup %1068  ;;  %v725_v0 = vmul.f32 %v1067_v19, %v717_v25 }
 0x1ec   : > { %v855_v8 = vrot.slane %v854_v4, 1  ;;  %1074 = vrcp.f32 %v802_v1  ;;  %v727_v37 = vmul.f32 %v1069_v21, %v723_v33  ;;  %vm882_vm10 = vcmp.eq.s32.totalorder %v879_v14, 0 }
 0x1ed   : > { %1076 = vlog2.f32 %v850_v7  ;;  %vm883_vm11 = vcmp.eq.s32.totalorder %v881_v15, 0  ;;  %vm887_vm12 = vcmp.eq.s32.totalorder %v881_v15, 1 }
 0x1ee   : > { %v856_v11 = vadd.f32 %v855_v8, %v854_v4  ;;  %1078 = vrcp.f32 %v808_v59  ;;  %vm884_vm13 = vmand %vm882_vm10, %vm883_vm11 }
 0x1ef   : > { %vm888_vm14 = vmand %vm882_vm10, %vm887_vm12 }
 0x1f0   : > { %1080 = vlog2.f32 %v856_v11 }
 0x1f6   : > { %v1071_v23 = vpop.eup %1070 }
 0x1f7   : > { %v759_v26 = vmul.f32 0.6931472, %v1071_v23 }
 0x1f8   : > { %v1073_v24 = vpop.eup %1072 }
 0x1f9   : > { %v761_v60 = vmul.f32 0.6931472, %v1073_v24  ;;  %v1075_v34 = vpop.eup %1074  ;;  %v762_v35 = vadd.f32 %v759_v26, %v1247_v18 }
 0x1fa   : > { %v1077_v36 = vpop.eup %1076  ;;  %v824_v48 = vmul.f32 %v1075_v34, %v816_v43 }
 0x1fb   : > { %v763_v39 = vadd.f32 %v761_v60, %v1252_v27  ;;  %v1079_v32 = vpop.eup %1078  ;;  %v764_v42 = vsub.f32 %v762_v35, %v725_v0  ;;  %v858_v31 = vmul.f32 0.6931472, %v1077_v36 }
 0x1fc   : > { %v826_v40 = vmul.f32 %v1079_v32, %v822_v45 }
 0x1fd   : > { %v1081_v30 = vpop.eup %1080  ;;  %v765_v44 = vsub.f32 %v763_v39, %v727_v37  ;;  %v861_v47 = vadd.f32 %v858_v31, %v1258_v41  ;;  %v766_v51 = vsel %vm378_vm0, %v764_v42, 0.0 }
 0x1fe   : > { %v860_v38 = vmul.f32 0.6931472, %v1081_v30 }
 0x1ff   : > { %v767_v18 = vsel %vm378_vm0, %v765_v44, 0.0  ;;  %v863_v27 = vsub.f32 %v861_v47, %v824_v48 }
 0x200   : > { %v768_v52 = vadd.f32 %v767_v18, %v766_v51  ;;  %v862_v53 = vadd.f32 %v860_v38, %v1263_v49 }
 0x201   : > { %v865_v56 = vsel %vm378_vm0, %v863_v27, 0.0 }
 0x202   : > { %769 = vadd.xlane.f32.xlu0 %v768_v52  ;;  %v864_v54 = vsub.f32 %v862_v53, %v826_v40 }
 0x204   : > { %v866_v57 = vsel %vm378_vm0, %v864_v54, 0.0 }
 0x205   : > { %v867_v58 = vadd.f32 %v866_v57, %v865_v56 }
 0x207   : > { %868 = vadd.xlane.f32.xlu0 %v867_v58 }
 0x264   : > { %v672_v61 = vpop.xlane.xlu1 %671 }
 0x265   : > { %v673_v46 = vrot.slane %v672_v61, 4 }
 0x267   : > { %v674_v41 = vadd.f32 %v673_v46, %v672_v61 }
 0x269   : > { %v675_v55 = vrot.slane %v674_v41, 2 }
 0x26b   : > { %v676_v62 = vadd.f32 %v675_v55, %v674_v41 }
 0x26d   : > { %v677_v63 = vrot.slane %v676_v62, 1 }
 0x26f   : > { %v678_v1 = vadd.f32 %v677_v63, %v676_v62 }
 0x271   : > { %1017 = vpush %v678_v1 }
 0x28b   : > { %v770_v50 = vpop.xlane.xlu0 %769 }
 0x28c   : > { %v771_v2 = vrot.slane %v770_v50, 4 }
 0x28e   : > { %v772_v49 = vadd.f32 %v771_v2, %v770_v50 }
 0x290   : > { %v773_v3 = vrot.slane %v772_v49, 2  ;;  %v869_v4 = vpop.xlane.xlu0 %868 }
 0x291   : > { %v870_v59 = vrot.slane %v869_v4, 4 }
 0x292   : > { %v774_v5 = vadd.f32 %v773_v3, %v772_v49 }
 0x293   : > { %v871_v6 = vadd.f32 %v870_v59, %v869_v4 }
 0x294   : > { %v775_v7 = vrot.slane %v774_v5, 1 }
 0x295   : > { %v872_v8 = vrot.slane %v871_v6, 2 }
 0x296   : > { %v776_v9 = vadd.f32 %v775_v7, %v774_v5 }
 0x297   : > { %v873_v10 = vadd.f32 %v872_v8, %v871_v6 }
 0x298   : > { %1019 = vpush %v776_v9 }
 0x299   : > { %v874_v11 = vrot.slane %v873_v10, 1 }
 0x29b   : > { %v875_v12 = vadd.f32 %v874_v11, %v873_v10 }
 0x29d   : > { %1021 = vpush %v875_v12 }
 0x2a2   : > { %s1018_s10 = spop %1017 }
 0x2a3   : > { %v885_v16 = vstv %s1018_s10 }
 0x2a4   : > { %v886_v19 = vsel %vm884_vm13, %v885_v16, 0.0 }
 0x2c9   : > { %s1020_s11 = spop %1019 }
 0x2ce   : > { %s1022_s12 = spop %1021 }
 0x2cf   : > { %s877_s13 = sadd.f32 %s1022_s12, %s1020_s11 }
 0x2d1   : > { %v889_v17 = vstv %s877_s13 }
 0x2d2   : > { %v890_v20 = vsel %vm888_vm14, %v889_v17, 0.0 }
 0x2d3   : > { %v891_v21 = vadd.f32 %v890_v20, %v886_v19 }
 0x2d5   : > { %899 = vst [vmem:[%s313_s16] sm:$0xff] %v891_v21 }
 0x2d6 PF: > { %s16_s23 = sadd.s32 1, %s1104_s23   ;;  %s1300_s21 = smov %s1100_s22 }
 0x2d7   : > { %p13_p5 = scmp.ge.s32.totalorder %s16_s23, 4   ;;  %s1301_s22 = smov %s1303_s24 }
 0x2d9   :  { %15 = sbr.rel (!%p13_p5) target bundleno = 2 (0x2), region = 81 }

</bundles_post_ra>
